<compile_context>
chip_gen: v5e
topology: v5e:2x2
jax: 0.10.0
libtpu: 0.0.40
codegen_flags: <defaults>
</compile_context>

<pallas_src>
import numpy as np
import jax
import jax.numpy as jnp
from jax.experimental import pallas as pl
from jax.experimental.pallas import tpu as pltpu


# ----------------------------------------------------------------------------
# Fused kernel: weighted cross-entropy (in-kernel reduction) + per-query argmax
# + matched-box L1 / (1 - GIoU) sums.  One pallas_call per prediction head.
# ----------------------------------------------------------------------------
def _make_loss_kernel(num_classes, eos_coef, n_valid, tile_n, num_matches):
    num_classes = int(num_classes)
    eos_coef = float(eos_coef)
    n_valid = int(n_valid)
    tile_n = int(tile_n)
    num_matches = int(num_matches)

    def kernel(logits_ref, tgt_ref, srcb_ref, tgtb_ref, pred_ref, part_ref):
        x = logits_ref[...].astype(jnp.float32)            # (T, C1)
        T, C1 = x.shape

        # ---- row validity: last tile of a multi-tile grid may read OOB ----
        row = (jax.lax.broadcasted_iota(jnp.int32, (T, 1), 0)
               + pl.program_id(0) * tile_n)
        valid = row < n_valid                              # (T, 1) bool
        # sanitize BEFORE exp/log: select (not multiply), so garbage never
        # reaches the math and NaN can never leak into the sums.
        x = jnp.where(valid, x, jnp.float32(0.0))
        tgt = jnp.where(valid, tgt_ref[...], num_classes)  # (T, 1) int32

        # ---- weighted cross-entropy over the class (lane) axis ----
        m = jnp.max(x, axis=1, keepdims=True)              # (T, 1)
        lse = m + jnp.log(jnp.sum(jnp.exp(x - m), axis=1, keepdims=True))
        cls_ids = jax.lax.broadcasted_iota(jnp.int32, (T, C1), 1)
        onehot = cls_ids == tgt                            # (T, C1)
        logit_t = jnp.sum(jnp.where(onehot, x, jnp.float32(0.0)),
                          axis=1, keepdims=True)
        # empty_weight = ones with last class = eos_coef -> one select
        w_t = jnp.where(tgt == num_classes, jnp.float32(eos_coef),
                        jnp.float32(1.0))
        validf = valid.astype(jnp.float32)
        nll_sum = jnp.sum(validf * w_t * (lse - logit_t), keepdims=True)  # (1,1)
        w_sum = jnp.sum(validf * w_t, keepdims=True)                      # (1,1)

        # ---- per-query argmax (lowest-index tie break, torch semantics) ----
        is_max = x == m
        predf = jnp.min(jnp.where(is_max, cls_ids.astype(jnp.float32),
                                  jnp.float32(C1)), axis=1, keepdims=True)
        pred_ref[...] = predf.astype(jnp.int32)            # (T, 1)

        # ---- matched-box L1 + (1 - GIoU); tiny resident inputs ----
        sb = srcb_ref[...].astype(jnp.float32)             # (M_pad, 2) (cx, w)
        tb = tgtb_ref[...].astype(jnp.float32)
        mrow = jax.lax.broadcasted_iota(jnp.int32, (sb.shape[0], 1), 0)
        mvalid = mrow < num_matches                        # (M_pad, 1) bool
        s_cx, s_w = sb[:, 0:1], sb[:, 1:2]
        t_cx, t_w = tb[:, 0:1], tb[:, 1:2]
        l1 = jnp.abs(s_cx - t_cx) + jnp.abs(s_w - t_w)
        s1, s2 = s_cx - 0.5 * s_w, s_cx + 0.5 * s_w
        t1, t2 = t_cx - 0.5 * t_w, t_cx + 0.5 * t_w
        eps = jnp.float32(1e-7)
        inter = jnp.maximum(jnp.minimum(s2, t2) - jnp.maximum(s1, t1), 0.0)
        union = (s2 - s1) + (t2 - t1) - inter
        iou = inter / jnp.maximum(union, eps)
        enclose = jnp.maximum(s2, t2) - jnp.minimum(s1, t1)
        giou = iou - (enclose - union) / jnp.maximum(enclose, eps)
        l1_sum = jnp.sum(jnp.where(mvalid, l1, jnp.float32(0.0)),
                         keepdims=True)                    # (1,1)
        giou_sum = jnp.sum(jnp.where(mvalid, 1.0 - giou, jnp.float32(0.0)),
                           keepdims=True)                  # (1,1)

        # ---- lane-dense (1,128) per-tile partials ----
        # lane 0: Σ w*nll, 1: Σ w, 2: Σ L1, 3: Σ (1-GIoU)  (lanes 2/3 read from
        # tile 0 only on the host side — box inputs are identical per tile).
        lane = jax.lax.broadcasted_iota(jnp.int32, part_ref.shape, 1)
        part_ref[...] = jnp.where(
            lane == 0, nll_sum,
            jnp.where(lane == 1, w_sum,
                      jnp.where(lane == 2, l1_sum,
                                jnp.where(lane == 3, giou_sum,
                                          jnp.float32(0.0)))))

    return kernel


_MAX_TILE_ROWS = 4096  # VMEM never binds here; cap keeps edge blocks cheap


def _choose_tile(n):
    """Single tile when it fits; otherwise 16-aligned tiles, even tile count."""
    if n <= _MAX_TILE_ROWS:
        return n, 1
    num = pl.cdiv(n, _MAX_TILE_ROWS)
    if num % 2:          # even split across v7x's two TensorCores (megacore)
        num += 1
    tile = pl.cdiv(pl.cdiv(n, num), 16) * 16   # 16-row multiple (f32 & bf16 safe)
    return tile, pl.cdiv(n, tile)


def run_detr_loss_kernel(logits2d, target_classes, src_boxes_m, tgt_boxes_m,
                         num_classes, eos_coef, num_matches):
    """Fused DETR loss kernel for one prediction head.

    logits2d:       (N, C1)   f32/bf16 flattened class logits (read in place)
    target_classes: (N, 1)    int32 matched class per query (no-object default)
    src_boxes_m:    (M_pad,2) matched predicted boxes (cx, w), padded
    tgt_boxes_m:    (M_pad,2) matched target boxes (cx, w), padded
    Returns (Σ w*nll, Σ w, Σ L1, Σ (1-GIoU), per-query argmax class (N,)).
    """
    N, C1 = logits2d.shape
    M_pad = src_boxes_m.shape[0]
    tile_n, num_tiles = _choose_tile(N)

    kernel = _make_loss_kernel(num_classes, eos_coef, N, tile_n, num_matches)
    pred, partials = pl.pallas_call(
        kernel,
        grid=(num_tiles,),
        in_specs=[
            pl.BlockSpec((tile_n, C1), lambda i: (i, 0)),     # logits, native layout
            pl.BlockSpec((tile_n, 1), lambda i: (i, 0)),      # target classes
            pl.BlockSpec((M_pad, 2), lambda i: (0, 0)),       # matched src boxes (resident)
            pl.BlockSpec((M_pad, 2), lambda i: (0, 0)),       # matched tgt boxes (resident)
        ],
        out_specs=(
            pl.BlockSpec((tile_n, 1), lambda i: (i, 0)),      # per-query argmax
            pl.BlockSpec((1, 128), lambda i: (0, i)),         # per-tile partials
        ),
        out_shape=(
            jax.ShapeDtypeStruct((N, 1), jnp.int32),
            jax.ShapeDtypeStruct((1, num_tiles * 128), jnp.float32),
        ),
        compiler_params=pltpu.CompilerParams(
            dimension_semantics=("parallel",)),               # 2x on v7x megacore
    )(logits2d, target_classes, src_boxes_m, tgt_boxes_m)

    p = partials.reshape(num_tiles, 128)
    nll_sum = jnp.sum(p[:, 0])
    w_sum = jnp.sum(p[:, 1])
    l1_sum = p[0, 2]       # box sums are identical per tile -> take tile 0
    giou_sum = p[0, 3]
    return nll_sum, w_sum, l1_sum, giou_sum, pred[:, 0]


# ----------------------------------------------------------------------------
# SetCriterion (forward only), Pallas-backed
# ----------------------------------------------------------------------------
class SetCriterionPallas:
    def __init__(self, num_classes, matcher, weight_dict, eos_coef, losses):
        self.num_classes = num_classes
        self.matcher = matcher
        self.weight_dict = weight_dict
        self.eos_coef = eos_coef
        self.losses = losses
        # kept for parity with the torch buffer; the kernel folds it into a select
        self.empty_weight = jnp.ones((num_classes + 1,), jnp.float32).at[-1].set(
            eos_coef)

    # --- matcher output (variable-length, host) -> padded fixed-shape tensors
    def _pack_matches(self, indices, targets, num_queries):
        src_list, lbl_list, box_list = [], [], []
        for b, (src, tgt) in enumerate(indices):
            src = np.asarray(src, dtype=np.int64)
            tgt = np.asarray(tgt, dtype=np.int64)
            src_list.append(b * num_queries + src)
            lbl_list.append(np.asarray(targets[b]['labels'])[tgt])
            box_list.append(np.asarray(targets[b]['boxes']).reshape(-1, 2)[tgt])
        m = int(sum(s.size for s in src_list))
        m_pad = max(8, ((max(m, 1) + 7) // 8) * 8)
        flat_idx = np.zeros((m_pad,), np.int32)
        labels = np.full((m_pad,), self.num_classes, np.int32)
        tboxes = np.zeros((m_pad, 2), np.float32)
        if m > 0:
            flat_idx[:m] = np.concatenate(src_list)
            labels[:m] = np.concatenate(lbl_list)
            tboxes[:m] = np.concatenate(box_list, axis=0)
        valid = np.arange(m_pad) < m
        return m, flat_idx, labels, tboxes, valid

    def _losses_for_head(self, head_outputs, targets, num_boxes, log=True):
        pred_logits = head_outputs['pred_logits']     # (B, Q, C+1)
        pred_boxes = head_outputs['pred_boxes']       # (B, Q, 2)
        B, Q, C1 = pred_logits.shape
        N = B * Q

        indices = self.matcher(head_outputs, targets)
        m, flat_idx_np, labels_np, tboxes_np, valid_np = self._pack_matches(
            indices, targets, Q)

        # --- device-side glue: one scatter + one gather, all fixed shapes ---
        flat_idx = jnp.asarray(flat_idx_np)                          # padded -> 0 (masked)
        scatter_idx = jnp.asarray(
            np.where(valid_np, flat_idx_np, N).astype(np.int32))     # padded -> junk slot
        labels = jnp.asarray(labels_np)
        valid = jnp.asarray(valid_np)

        logits2d = pred_logits.reshape(N, C1)
        boxes2d = pred_boxes.reshape(N, -1)
        target_classes = (jnp.full((N + 1,), self.num_classes, jnp.int32)
                          .at[scatter_idx].set(labels))[:N].reshape(N, 1)
        src_boxes_m = boxes2d[flat_idx]                              # (M_pad, 2)
        tgt_boxes_m = jnp.asarray(tboxes_np)

        nll_sum, w_sum, l1_sum, giou_sum, pred_cls = run_detr_loss_kernel(
            logits2d, target_classes, src_boxes_m, tgt_boxes_m,
            self.num_classes, self.eos_coef, m)

        losses = {}
        if 'labels' in self.losses:
            losses['loss_ce'] = nll_sum / w_sum
            if log:
                if m > 0:
                    correct = jnp.where(
                        valid,
                        (pred_cls[flat_idx] == labels).astype(jnp.float32), 0.0)
                    acc = 100.0 * jnp.sum(correct) / m
                else:
                    acc = jnp.float32(0.0)   # torch accuracy([])[0] == 0
                losses['class_error'] = 100.0 - acc
        if 'cardinality' in self.losses:
            card_pred = jnp.sum(
                (pred_cls.reshape(B, Q) != self.num_classes).astype(jnp.float32),
                axis=1)
            tgt_lengths = jnp.asarray([len(t['labels']) for t in targets],
                                      dtype=jnp.float32)
            losses['cardinality_error'] = jnp.mean(jnp.abs(card_pred - tgt_lengths))
        if 'boxes' in self.losses:
            losses['loss_bbox'] = l1_sum / num_boxes
            losses['loss_giou'] = giou_sum / num_boxes
        return losses

    def forward(self, outputs, targets):
        outputs_without_aux = {k: v for k, v in outputs.items() if k != 'aux_outputs'}
        num_boxes = float(sum(len(t['labels']) for t in targets))
        num_boxes = max(num_boxes, 1.0)
        # TODO(synk): under pmap/multi-host training, DETR all-reduces num_boxes
        # across replicas before dividing; single-device forward shown here.

        losses = self._losses_for_head(outputs_without_aux, targets, num_boxes,
                                       log=True)
        if 'aux_outputs' in outputs:
            for i, aux_outputs in enumerate(outputs['aux_outputs']):
                aux_l = self._losses_for_head(aux_outputs, targets, num_boxes,
                                              log=False)
                losses.update({f'{k}_{i}': v for k, v in aux_l.items()})
        return losses


# ----------------------------------------------------------------------------
# Deterministic stand-in matcher (HungarianMatcher is an external module).
# TODO(synk): HungarianMatcher not provided; identity assignment of the first
# T_b queries to targets, which is a valid permutation matching.
# ----------------------------------------------------------------------------
def identity_matcher(outputs, targets):
    return [(np.arange(len(t['labels']), dtype=np.int32),
             np.arange(len(t['labels']), dtype=np.int32)) for t in targets]


# ----------------------------------------------------------------------------
# Pure-numpy reference (mirrors the torch SetCriterion math) for validation.
# ----------------------------------------------------------------------------
def _reference_losses(outputs, targets, indices, num_classes, eos_coef):
    logits = np.asarray(outputs['pred_logits'], np.float64)
    boxes = np.asarray(outputs['pred_boxes'], np.float64)
    B, Q, C1 = logits.shape
    tcls = np.full((B, Q), num_classes, np.int64)
    sb, tb, fi, lbl = [], [], [], []
    for b, (src, tgt) in enumerate(indices):
        src = np.asarray(src, np.int64); tgt = np.asarray(tgt, np.int64)
        tcls[b, src] = np.asarray(targets[b]['labels'])[tgt]
        sb.append(boxes[b, src])
        tb.append(np.asarray(targets[b]['boxes'], np.float64).reshape(-1, 2)[tgt])
        fi.append(b * Q + src)
        lbl.append(np.asarray(targets[b]['labels'])[tgt])
    sb, tb = np.concatenate(sb, 0), np.concatenate(tb, 0)
    fi, lbl = np.concatenate(fi), np.concatenate(lbl)
    num_boxes = max(float(sum(len(t['labels']) for t in targets)), 1.0)

    flat = logits.reshape(-1, C1); t = tcls.reshape(-1)
    mx = flat.max(-1, keepdims=True)
    lse = (mx + np.log(np.exp(flat - mx).sum(-1, keepdims=True)))[:, 0]
    nll = lse - flat[np.arange(t.size), t]
    w = np.where(t == num_classes, eos_coef, 1.0)
    ref = {'loss_ce': (w * nll).sum() / w.sum()}

    pred = flat.argmax(-1)
    acc = 100.0 * float((pred[fi] == lbl).mean()) if fi.size else 0.0
    ref['class_error'] = 100.0 - acc
    card_pred = (pred.reshape(B, Q) != num_classes).sum(1)
    tl = np.array([len(t['labels']) for t in targets], np.float64)
    ref['cardinality_error'] = np.abs(card_pred - tl).mean()

    ref['loss_bbox'] = np.abs(sb - tb).sum() / num_boxes
    s1, s2 = sb[:, 0] - 0.5 * sb[:, 1], sb[:, 0] + 0.5 * sb[:, 1]
    t1, t2 = tb[:, 0] - 0.5 * tb[:, 1], tb[:, 0] + 0.5 * tb[:, 1]
    inter = np.clip(np.minimum(s2, t2) - np.maximum(s1, t1), 0.0, None)
    union = (s2 - s1) + (t2 - t1) - inter
    iou = inter / union
    enc = np.maximum(s2, t2) - np.minimum(s1, t1)
    giou = iou - (enc - union) / enc
    ref['loss_giou'] = (1.0 - giou).sum() / num_boxes
    return ref


if __name__ == "__main__":
    key = jax.random.PRNGKey(0)
    B, Q, num_classes = 2, 8, 5
    C1 = num_classes + 1

    k1, k2, k3, k4 = jax.random.split(key, 4)
    pred_logits = jax.random.normal(k1, (B, Q, C1), dtype=jnp.float32)
    pred_boxes = jax.nn.sigmoid(jax.random.normal(k2, (B, Q, 2),
                                                  dtype=jnp.float32))
    outputs = {'pred_logits': pred_logits, 'pred_boxes': pred_boxes}

    # targets: batch 0 has 3 objects, batch 1 has 2 objects
    n_tgt = [3, 2]
    targets = []
    kl, kb = k3, k4
    for n in n_tgt:
        kl, sub_l = jax.random.split(kl)
        kb, sub_b = jax.random.split(kb)
        labels = np.asarray(
            jax.random.randint(sub_l, (n,), 0, num_classes, dtype=jnp.int32))
        boxes = np.asarray(
            jax.nn.sigmoid(jax.random.normal(sub_b, (n, 2), dtype=jnp.float32)))
        targets.append({'labels': labels, 'boxes': boxes})

    criterion = SetCriterionPallas(
        num_classes=num_classes,
        matcher=identity_matcher,
        weight_dict={'loss_ce': 1.0, 'loss_bbox': 5.0, 'loss_giou': 2.0},
        eos_coef=0.1,
        losses=['labels', 'cardinality', 'boxes'],
    )

    losses = criterion.forward(outputs, targets)
    losses = {k: jax.block_until_ready(v) for k, v in losses.items()}

    # validate against a pure-numpy reference of the torch math
    ref = _reference_losses(outputs, targets, identity_matcher(outputs, targets),
                            num_classes, 0.1)
    for k, v in ref.items():
        np.testing.assert_allclose(np.asarray(losses[k], np.float64), v,
                                   rtol=1e-4, atol=1e-4)
    assert all(np.isfinite(np.asarray(v)).all() for v in losses.values())
    print("KERNEL_OK")
</pallas_src>

<mosaic_0001>
module attributes {stable_mosaic.version = 11 : i64} {
  func.func @kernel(%arg0: i32, %arg1: memref<16x6xf32, #tpu.memory_space<vmem>>, %arg2: memref<16x1xi32, #tpu.memory_space<vmem>>, %arg3: memref<8x2xf32, #tpu.memory_space<vmem>>, %arg4: memref<8x2xf32, #tpu.memory_space<vmem>>, %arg5: memref<16x1xi32, #tpu.memory_space<vmem>>, %arg6: memref<1x128xf32, #tpu.memory_space<vmem>>) attributes {dimension_semantics = [#tpu.dimension_semantics<parallel>], iteration_bounds = array<i64: 1>, scalar_prefetch = 0 : i64, scratch_operands = 0 : i64, tpu.core_type = #tpu.core_type<tc>, window_params = [{transform_indices = @transform_0, window_bounds = array<i64: 16, 6>}, {transform_indices = @transform_1, window_bounds = array<i64: 16, 1>}, {pipeline_mode = #tpu.pipeline_mode<synchronous>, transform_indices = @transform_2, window_bounds = array<i64: 8, 2>}, {pipeline_mode = #tpu.pipeline_mode<synchronous>, transform_indices = @transform_3, window_bounds = array<i64: 8, 2>}, {transform_indices = @transform_4, window_bounds = array<i64: 16, 1>}, {transform_indices = @transform_5, window_bounds = array<i64: 1, 128>}]} {
    %c0 = arith.constant 0 : index
    %c0_0 = arith.constant 0 : index
    %0 = vector.load %arg1[%c0, %c0_0] : memref<16x6xf32, #tpu.memory_space<vmem>>, vector<16x6xf32>
    %1 = tpu.iota {dimensions = array<i32: 0>} : vector<16x1xi32>
    %c16_i32 = arith.constant 16 : i32
    %2 = arith.muli %arg0, %c16_i32 : i32
    %3 = vector.broadcast %2 : i32 to vector<16x1xi32>
    %4 = arith.addi %1, %3 : vector<16x1xi32>
    %c16_i32_1 = arith.constant 16 : i32
    %5 = vector.broadcast %c16_i32_1 : i32 to vector<16x1xi32>
    %6 = arith.cmpi slt, %4, %5 : vector<16x1xi32>
    %cst = arith.constant 0.000000e+00 : f32
    %7 = vector.shape_cast %6 : vector<16x1xi1> to vector<16x1xi1>
    %8 = vector.broadcast %7 : vector<16x1xi1> to vector<16x6xi1>
    %9 = vector.broadcast %cst : f32 to vector<16x6xf32>
    %10 = arith.select %8, %0, %9 : vector<16x6xi1>, vector<16x6xf32>
    %c0_2 = arith.constant 0 : index
    %c0_3 = arith.constant 0 : index
    %11 = vector.load %arg2[%c0_2, %c0_3] : memref<16x1xi32, #tpu.memory_space<vmem>>, vector<16x1xi32>
    %c5_i32 = arith.constant 5 : i32
    %12 = vector.broadcast %c5_i32 : i32 to vector<16x1xi32>
    %13 = arith.select %6, %11, %12 : vector<16x1xi1>, vector<16x1xi32>
    %cst_4 = arith.constant dense<0xFF800000> : vector<16xf32>
    %14 = vector.multi_reduction <maximumf>, %10, %cst_4 [1] : vector<16x6xf32> to vector<16xf32>
    %15 = vector.shape_cast %14 : vector<16xf32> to vector<16x1xf32>
    %16 = vector.broadcast %15 : vector<16x1xf32> to vector<16x6xf32>
    %17 = arith.subf %10, %16 : vector<16x6xf32>
    %18 = math.exp %17 : vector<16x6xf32>
    %cst_5 = arith.constant dense<0.000000e+00> : vector<16xf32>
    %19 = vector.multi_reduction <add>, %18, %cst_5 [1] : vector<16x6xf32> to vector<16xf32>
    %20 = vector.shape_cast %19 : vector<16xf32> to vector<16x1xf32>
    %21 = math.log %20 : vector<16x1xf32>
    %22 = arith.addf %15, %21 : vector<16x1xf32>
    %23 = tpu.iota {dimensions = array<i32: 1>} : vector<16x6xi32>
    %24 = vector.broadcast %13 : vector<16x1xi32> to vector<16x6xi32>
    %25 = arith.cmpi eq, %23, %24 : vector<16x6xi32>
    %cst_6 = arith.constant 0.000000e+00 : f32
    %26 = vector.broadcast %cst_6 : f32 to vector<16x6xf32>
    %27 = arith.select %25, %10, %26 : vector<16x6xi1>, vector<16x6xf32>
    %cst_7 = arith.constant dense<0.000000e+00> : vector<16xf32>
    %28 = vector.multi_reduction <add>, %27, %cst_7 [1] : vector<16x6xf32> to vector<16xf32>
    %29 = vector.shape_cast %28 : vector<16xf32> to vector<16x1xf32>
    %c5_i32_8 = arith.constant 5 : i32
    %30 = vector.broadcast %c5_i32_8 : i32 to vector<16x1xi32>
    %31 = arith.cmpi eq, %13, %30 : vector<16x1xi32>
    %cst_9 = arith.constant 1.000000e-01 : f32
    %cst_10 = arith.constant 1.000000e+00 : f32
    %32 = vector.broadcast %cst_9 : f32 to vector<16x1xf32>
    %33 = vector.broadcast %cst_10 : f32 to vector<16x1xf32>
    %34 = arith.select %31, %32, %33 : vector<16x1xi1>, vector<16x1xf32>
    %35 = arith.extui %6 : vector<16x1xi1> to vector<16x1xi32>
    %36 = arith.sitofp %35 : vector<16x1xi32> to vector<16x1xf32>
    %37 = arith.mulf %36, %34 : vector<16x1xf32>
    %38 = arith.subf %22, %29 : vector<16x1xf32>
    %39 = arith.mulf %37, %38 : vector<16x1xf32>
    %40 = vector.shape_cast %39 : vector<16x1xf32> to vector<1x16x1xf32>
    %cst_11 = arith.constant dense<0.000000e+00> : vector<1xf32>
    %41 = vector.multi_reduction <add>, %40, %cst_11 [1, 2] : vector<1x16x1xf32> to vector<1xf32>
    %42 = vector.shape_cast %41 : vector<1xf32> to vector<1x1x1xf32>
    %43 = vector.extract %42[0, 0, 0] : f32 from vector<1x1x1xf32>
    %44 = vector.broadcast %43 : f32 to vector<1x1xf32>
    %45 = arith.mulf %36, %34 : vector<16x1xf32>
    %46 = vector.shape_cast %45 : vector<16x1xf32> to vector<1x16x1xf32>
    %cst_12 = arith.constant dense<0.000000e+00> : vector<1xf32>
    %47 = vector.multi_reduction <add>, %46, %cst_12 [1, 2] : vector<1x16x1xf32> to vector<1xf32>
    %48 = vector.shape_cast %47 : vector<1xf32> to vector<1x1x1xf32>
    %49 = vector.extract %48[0, 0, 0] : f32 from vector<1x1x1xf32>
    %50 = vector.broadcast %49 : f32 to vector<1x1xf32>
    %51 = vector.broadcast %15 : vector<16x1xf32> to vector<16x6xf32>
    %52 = arith.cmpf oeq, %10, %51 : vector<16x6xf32>
    %53 = arith.sitofp %23 : vector<16x6xi32> to vector<16x6xf32>
    %cst_13 = arith.constant 6.000000e+00 : f32
    %54 = vector.broadcast %cst_13 : f32 to vector<16x6xf32>
    %55 = arith.select %52, %53, %54 : vector<16x6xi1>, vector<16x6xf32>
    %cst_14 = arith.constant dense<0x7F800000> : vector<16xf32>
    %56 = vector.multi_reduction <minimumf>, %55, %cst_14 [1] : vector<16x6xf32> to vector<16xf32>
    %57 = vector.shape_cast %56 : vector<16xf32> to vector<16x1xf32>
    %58 = arith.fptosi %57 : vector<16x1xf32> to vector<16x1xi32>
    %c0_15 = arith.constant 0 : index
    %c0_16 = arith.constant 0 : index
    %59 = vector.load %arg5[%c0_15, %c0_16] : memref<16x1xi32, #tpu.memory_space<vmem>>, vector<16x1xi32>
    tpu.vector_store %arg5[%c0_15, %c0_16], %58 {strides = array<i32>} : memref<16x1xi32, #tpu.memory_space<vmem>>, vector<16x1xi32>,
    %c0_17 = arith.constant 0 : index
    %c0_18 = arith.constant 0 : index
    %60 = vector.load %arg3[%c0_17, %c0_18] : memref<8x2xf32, #tpu.memory_space<vmem>>, vector<8x2xf32>
    %c0_19 = arith.constant 0 : index
    %c0_20 = arith.constant 0 : index
    %61 = vector.load %arg4[%c0_19, %c0_20] : memref<8x2xf32, #tpu.memory_space<vmem>>, vector<8x2xf32>
    %62 = tpu.iota {dimensions = array<i32: 0>} : vector<8x1xi32>
    %c5_i32_21 = arith.constant 5 : i32
    %63 = vector.broadcast %c5_i32_21 : i32 to vector<8x1xi32>
    %64 = arith.cmpi slt, %62, %63 : vector<8x1xi32>
    %65 = vector.extract_strided_slice %60 {offsets = [0, 0], sizes = [8, 1], strides = [1, 1]} : vector<8x2xf32> to vector<8x1xf32>
    %66 = vector.extract_strided_slice %60 {offsets = [0, 1], sizes = [8, 1], strides = [1, 1]} : vector<8x2xf32> to vector<8x1xf32>
    %67 = vector.extract_strided_slice %61 {offsets = [0, 0], sizes = [8, 1], strides = [1, 1]} : vector<8x2xf32> to vector<8x1xf32>
    %68 = vector.extract_strided_slice %61 {offsets = [0, 1], sizes = [8, 1], strides = [1, 1]} : vector<8x2xf32> to vector<8x1xf32>
    %69 = arith.subf %65, %67 : vector<8x1xf32>
    %70 = math.absf %69 : vector<8x1xf32>
    %71 = arith.subf %66, %68 : vector<8x1xf32>
    %72 = math.absf %71 : vector<8x1xf32>
    %73 = arith.addf %70, %72 : vector<8x1xf32>
    %cst_22 = arith.constant 5.000000e-01 : f32
    %74 = vector.broadcast %cst_22 : f32 to vector<8x1xf32>
    %75 = arith.mulf %74, %66 : vector<8x1xf32>
    %76 = arith.subf %65, %75 : vector<8x1xf32>
    %cst_23 = arith.constant 5.000000e-01 : f32
    %77 = vector.broadcast %cst_23 : f32 to vector<8x1xf32>
    %78 = arith.mulf %77, %66 : vector<8x1xf32>
    %79 = arith.addf %65, %78 : vector<8x1xf32>
    %cst_24 = arith.constant 5.000000e-01 : f32
    %80 = vector.broadcast %cst_24 : f32 to vector<8x1xf32>
    %81 = arith.mulf %80, %68 : vector<8x1xf32>
    %82 = arith.subf %67, %81 : vector<8x1xf32>
    %cst_25 = arith.constant 5.000000e-01 : f32
    %83 = vector.broadcast %cst_25 : f32 to vector<8x1xf32>
    %84 = arith.mulf %83, %68 : vector<8x1xf32>
    %85 = arith.addf %67, %84 : vector<8x1xf32>
    %86 = arith.minimumf %79, %85 : vector<8x1xf32>
    %87 = arith.maximumf %76, %82 : vector<8x1xf32>
    %88 = arith.subf %86, %87 : vector<8x1xf32>
    %cst_26 = arith.constant 0.000000e+00 : f32
    %89 = vector.broadcast %cst_26 : f32 to vector<8x1xf32>
    %90 = arith.maximumf %88, %89 : vector<8x1xf32>
    %91 = arith.subf %79, %76 : vector<8x1xf32>
    %92 = arith.subf %85, %82 : vector<8x1xf32>
    %93 = arith.addf %91, %92 : vector<8x1xf32>
    %94 = arith.subf %93, %90 : vector<8x1xf32>
    %cst_27 = arith.constant 1.000000e-07 : f32
    %95 = vector.broadcast %cst_27 : f32 to vector<8x1xf32>
    %96 = arith.maximumf %94, %95 : vector<8x1xf32>
    %97 = arith.divf %90, %96 : vector<8x1xf32>
    %98 = arith.maximumf %79, %85 : vector<8x1xf32>
    %99 = arith.minimumf %76, %82 : vector<8x1xf32>
    %100 = arith.subf %98, %99 : vector<8x1xf32>
    %101 = arith.subf %100, %94 : vector<8x1xf32>
    %cst_28 = arith.constant 1.000000e-07 : f32
    %102 = vector.broadcast %cst_28 : f32 to vector<8x1xf32>
    %103 = arith.maximumf %100, %102 : vector<8x1xf32>
    %104 = arith.divf %101, %103 : vector<8x1xf32>
    %105 = arith.subf %97, %104 : vector<8x1xf32>
    %cst_29 = arith.constant 0.000000e+00 : f32
    %106 = vector.broadcast %cst_29 : f32 to vector<8x1xf32>
    %107 = arith.select %64, %73, %106 : vector<8x1xi1>, vector<8x1xf32>
    %108 = vector.shape_cast %107 : vector<8x1xf32> to vector<1x8x1xf32>
    %cst_30 = arith.constant dense<0.000000e+00> : vector<1xf32>
    %109 = vector.multi_reduction <add>, %108, %cst_30 [1, 2] : vector<1x8x1xf32> to vector<1xf32>
    %110 = vector.shape_cast %109 : vector<1xf32> to vector<1x1x1xf32>
    %111 = vector.extract %110[0, 0, 0] : f32 from vector<1x1x1xf32>
    %112 = vector.broadcast %111 : f32 to vector<1x1xf32>
    %cst_31 = arith.constant 1.000000e+00 : f32
    %113 = vector.broadcast %cst_31 : f32 to vector<8x1xf32>
    %114 = arith.subf %113, %105 : vector<8x1xf32>
    %cst_32 = arith.constant 0.000000e+00 : f32
    %115 = vector.broadcast %cst_32 : f32 to vector<8x1xf32>
    %116 = arith.select %64, %114, %115 : vector<8x1xi1>, vector<8x1xf32>
    %117 = vector.shape_cast %116 : vector<8x1xf32> to vector<1x8x1xf32>
    %cst_33 = arith.constant dense<0.000000e+00> : vector<1xf32>
    %118 = vector.multi_reduction <add>, %117, %cst_33 [1, 2] : vector<1x8x1xf32> to vector<1xf32>
    %119 = vector.shape_cast %118 : vector<1xf32> to vector<1x1x1xf32>
    %120 = vector.extract %119[0, 0, 0] : f32 from vector<1x1x1xf32>
    %121 = vector.broadcast %120 : f32 to vector<1x1xf32>
    %122 = tpu.iota {dimensions = array<i32: 1>} : vector<1x128xi32>
    %c0_i32 = arith.constant 0 : i32
    %123 = vector.broadcast %c0_i32 : i32 to vector<1x128xi32>
    %124 = arith.cmpi eq, %122, %123 : vector<1x128xi32>
    %c1_i32 = arith.constant 1 : i32
    %125 = vector.broadcast %c1_i32 : i32 to vector<1x128xi32>
    %126 = arith.cmpi eq, %122, %125 : vector<1x128xi32>
    %c2_i32 = arith.constant 2 : i32
    %127 = vector.broadcast %c2_i32 : i32 to vector<1x128xi32>
    %128 = arith.cmpi eq, %122, %127 : vector<1x128xi32>
    %c3_i32 = arith.constant 3 : i32
    %129 = vector.broadcast %c3_i32 : i32 to vector<1x128xi32>
    %130 = arith.cmpi eq, %122, %129 : vector<1x128xi32>
    %cst_34 = arith.constant 0.000000e+00 : f32
    %131 = vector.shape_cast %121 : vector<1x1xf32> to vector<1x1xf32>
    %132 = vector.broadcast %131 : vector<1x1xf32> to vector<1x128xf32>
    %133 = vector.broadcast %cst_34 : f32 to vector<1x128xf32>
    %134 = arith.select %130, %132, %133 : vector<1x128xi1>, vector<1x128xf32>
    %135 = vector.shape_cast %112 : vector<1x1xf32> to vector<1x1xf32>
    %136 = vector.broadcast %135 : vector<1x1xf32> to vector<1x128xf32>
    %137 = arith.select %128, %136, %134 : vector<1x128xi1>, vector<1x128xf32>
    %138 = vector.shape_cast %50 : vector<1x1xf32> to vector<1x1xf32>
    %139 = vector.broadcast %138 : vector<1x1xf32> to vector<1x128xf32>
    %140 = arith.select %126, %139, %137 : vector<1x128xi1>, vector<1x128xf32>
    %141 = vector.shape_cast %44 : vector<1x1xf32> to vector<1x1xf32>
    %142 = vector.broadcast %141 : vector<1x1xf32> to vector<1x128xf32>
    %143 = arith.select %124, %142, %140 : vector<1x128xi1>, vector<1x128xf32>
    %c0_35 = arith.constant 0 : index
    %c0_36 = arith.constant 0 : index
    %144 = vector.load %arg6[%c0_35, %c0_36] : memref<1x128xf32, #tpu.memory_space<vmem>>, vector<1x128xf32>
    tpu.vector_store %arg6[%c0_35, %c0_36], %143 {strides = array<i32>} : memref<1x128xf32, #tpu.memory_space<vmem>>, vector<1x128xf32>,
    return
  }
  func.func @transform_0(%arg0: i32) -> (i32, i32) {
    %c0_i32 = arith.constant 0 : i32
    %c0_i32_0 = arith.constant 0 : i32
    return %arg0, %c0_i32 : i32, i32
  }
  func.func @transform_1(%arg0: i32) -> (i32, i32) {
    %c0_i32 = arith.constant 0 : i32
    %c0_i32_0 = arith.constant 0 : i32
    return %arg0, %c0_i32 : i32, i32
  }
  func.func @transform_2(%arg0: i32) -> (i32, i32) {
    %c0_i32 = arith.constant 0 : i32
    %c0_i32_0 = arith.constant 0 : i32
    %c0_i32_1 = arith.constant 0 : i32
    return %c0_i32, %c0_i32_0 : i32, i32
  }
  func.func @transform_3(%arg0: i32) -> (i32, i32) {
    %c0_i32 = arith.constant 0 : i32
    %c0_i32_0 = arith.constant 0 : i32
    %c0_i32_1 = arith.constant 0 : i32
    return %c0_i32, %c0_i32_0 : i32, i32
  }
  func.func @transform_4(%arg0: i32) -> (i32, i32) {
    %c0_i32 = arith.constant 0 : i32
    %c0_i32_0 = arith.constant 0 : i32
    return %arg0, %c0_i32 : i32, i32
  }
  func.func @transform_5(%arg0: i32) -> (i32, i32) {
    %c0_i32 = arith.constant 0 : i32
    %c0_i32_0 = arith.constant 0 : i32
    return %c0_i32, %arg0 : i32, i32
  }
}

</mosaic_0001>

<bundles_post_ra>
// kernel: tpu_custom_call.1
= control target key start
LH: loop header
LB: loop body
LE: loop exit
PB: predicated region body
PF: predicated region fallthrough
CT: control target
= control target key end

     0   :  { %vm41_vm0 = vcmask 48128   ;;  %v323_v5 = vmov 0   ;;  %s324_s24 = smov 127   ;;  %s469_s0 = inlined_call_operand.vmem [shape: f32[16,6], index: 0, kind: input, shape index: {}]   ;;  %s470_s1 = inlined_call_operand.vmem [shape: s32[16,1], index: 1, kind: input, shape index: {}]   ;;  %s471_s2 = inlined_call_operand.vmem [shape: f32[8,2], index: 2, kind: input, shape index: {}]   ;;  %s472_s3 = inlined_call_operand.vmem [shape: f32[8,2], index: 3, kind: input, shape index: {}]   ;;  %s473_s4 = inlined_call_operand.vmem [shape: s32[16,1], index: 4, kind: output, shape index: {0}]   ;;  %s474_s5 = inlined_call_operand.hbm [shape: f32[1,128], index: 5, kind: output, shape index: {1}]  }
   0x1   :  { %v360_v0 = vld [vmem:[%s469_s0] sm:$0xff]  ;;  %283 = vset.pattern.permute.xlu1 %v323_v5  ;;  %284 = vset.pattern.permute.xlu0 %v323_v5 }
   0x2   :  { %v365_v1 = vld [vmem:[%s471_s2] sm:$0xff]  ;;  %v42_v3 = vsel %vm41_vm0, %v360_v0, -inf }
   0x3   :  { %v37_v2 = vld [vmem:[%s470_s1] sm:$0xff]  ;;  %v146_v4 = vmul.f32 0.5, %v365_v1  ;;  %43 = vmax.xlane.f32.xlu0 %v42_v3 }
   0x4   :  { %69 = vperm.xlu1 %283, %v37_v2  }
   0x5   :  { %148 = vrot.lane.b32.xlu2 %v146_v4, %s324_s24 }
   0x6   :  { %11 = vsyncpa [#allocation3], 0  ;;  %v377_v6 = vld [vmem:[%s469_s0 + $0x8] sm:$0xff]  ;;  %v382_v7 = vld [vmem:[%s472_s3] sm:$0xff]  ;;  %v22_v29 = vlaneseq  ;;  %vm84_vm1 = vcmp.eq.s32.totalorder %v37_v2, 5  ;;  %v325_v34 = vmov 1.0  }
   0x7   :  { %v45_v8 = vsel %vm41_vm0, %v377_v6, -inf  ;;  %v153_v9 = vmul.f32 0.5, %v382_v7  ;;  %v38_v10 = vld [vmem:[%s470_s1 + $0x8] sm:$0xff]  ;;  %v405_v35 = vsel %vm84_vm1, 0.1, %v325_v34  ;;  %vm96_vm4 = vcmask 7168  }
   0x8   :  { %vm85_vm2 = vcmp.eq.s32.totalorder %v38_v10, 5  ;;  %v403_v31 = vand.u32 127, %v22_v29  ;;  %v109_v47 = vsel %vm96_vm4, %v405_v35, 0.0  ;;  %s326_s10 = smov [#allocation2]   ;;  %s250_s14 = sshll.u32 %s474_s5, 4  ;;  %s251_s14 = int_to_ptr.hbm [resolvable:$true] %s250_s14 }
   0x9   :  { %v410_v37 = vsel %vm85_vm2, 0.1, %v325_v34  ;;  %s248_s11 = sshll.u32 %s326_s10, 4  ;;  %s249_s11 = int_to_ptr.vmem [resolvable:$true] %s248_s11 }
   0xa   :  { %v110_v48 = vsel %vm96_vm4, %v410_v37, 0.0 }
   0xb   :  { %46 = vmax.xlane.f32.xlu0 %v45_v8  ;;  %v111_v55 = vadd.f32 %v110_v48, %v109_v47 }
   0xc   :  { %72 = vperm.xlu1 %283, %v38_v10  }
   0xd   :  { %155 = vrot.lane.b32.xlu2 %v153_v9, %s324_s24 }
  0x5f   :  { %v149_v11 = vpop.permute.xlu2 %148 }
  0x60   :  { %v151_v12 = vsub.f32 %v365_v1, %v149_v11  ;;  %v152_v13 = vadd.f32 %v149_v11, %v365_v1 }
  0x62   :  { %v164_v15 = vsub.f32 %v152_v13, %v151_v12 }
  0x67   :  { %v156_v14 = vpop.permute.xlu2 %155 }
  0x68   :  { %v158_v16 = vsub.f32 %v382_v7, %v156_v14  ;;  %v159_v17 = vadd.f32 %v156_v14, %v382_v7 }
  0x6a   :  { %v160_v18 = vmin.f32 %v152_v13, %v159_v17  ;;  %v161_v19 = vmax.f32 %v151_v12, %v158_v16  ;;  %v165_v20 = vsub.f32 %v159_v17, %v158_v16  ;;  %v184_v21 = vmax.f32 %v152_v13, %v159_v17 }
  0x6b   :  { %v185_v22 = vmin.f32 %v151_v12, %v158_v16  ;;  %v23_v12 = vshrl.u32 %v22_v29, 7 }
  0x6c   :  { %v395_v23 = vsub.f32 %v160_v18, %v161_v19  ;;  %v166_v24 = vadd.f32 %v165_v20, %v164_v15 }
  0x6d   :  { %v397_v25 = vsub.f32 %v184_v21, %v185_v22  ;;  %vm138_vm14 = vcmp.lt.s32.totalorder %v23_v12, 5 }
  0x6e   :  { %v163_v26 = vmax.f32 %v395_v23, 0.0  ;;  %v123_v23 = vcvt.s32.f32 %v403_v31 }
  0x6f   :  { %v188_v27 = vmax.f32 %v397_v25, 1e-07 }
  0x70   :  { %v167_v28 = vsub.f32 %v166_v24, %v163_v26 }
  0x71   :  { %285 = vrcp.f32 %v188_v27  ;;  %v200_v41 = vand.u32 2147483648, %v188_v27  ;;  %vm194_vm5 = vweird.f32 %v188_v27  ;;  %v198_v46 = vand.u32 2147483647, %v188_v27 }
  0x72   :  { %v168_v30 = vmax.f32 %v167_v28, 1e-07  ;;  %v187_v59 = vsub.f32 %v397_v25, %v167_v28 }
  0x73   :  { %v201_v52 = vor.u32 1.1754944e-38, %v200_v41  ;;  %vm199_vm10 = vcmp.eq.f32.partialorder %v198_v46, 8.507059e+37 }
  0x74   :  { %287 = vrcp.f32 %v168_v30  ;;  %v180_v50 = vand.u32 2147483648, %v168_v30  ;;  %vm174_vm7 = vweird.f32 %v168_v30  ;;  %v178_v54 = vand.u32 2147483647, %v168_v30 }
  0x76   :  { %v70_v32 = vpop.permute.xlu1 %69  ;;  %v407_v36 = vpop.xlane.xlu0 %43  ;;  %v181_v62 = vor.u32 1.1754944e-38, %v180_v50  ;;  %vm179_vm12 = vcmp.eq.f32.partialorder %v178_v54, 8.507059e+37 }
  0x77   :  { %v286_v33 = vpop.eup %285  ;;  %vm74_vm3 = vcmp.eq.s32.totalorder %v403_v31, %v70_v32  ;;  %v48_v38 = vsub.f32 %v360_v0, %v407_v36  ;;  %vm121_vm2 = vcmp.eq.f32.partialorder %v360_v0, %v407_v36 }
  0x78   :  { %v76_v39 = vsel %vm74_vm3, %v360_v0, 0.0  ;;  %v190_v40 = vmul.f32 %v286_v33, %v188_v27  ;;  %vm195_vm6 = vweird.f32 %v286_v33  ;;  %vm231_vm3 = vcmp.eq.s32.totalorder %v403_v31, 3 }
  0x79   :  { %v78_v42 = vsel %vm41_vm0, %v76_v39, 0.0  ;;  %v50_v44 = vmul.f32 1.442695, %v48_v38  ;;  %vm196_vm9 = vmor %vm194_vm5, %vm195_vm6  ;;  %vm230_vm5 = vcmp.eq.s32.totalorder %v403_v31, 2  ;;  %vm229_vm6 = vcmp.eq.s32.totalorder %v403_v31, 1 }
  0x7a   :  { %v288_v43 = vpop.eup %287  ;;  %79 = vadd.xlane.f32.xlu2 %v78_v42  ;;  %v191_v45 = vsub.f32 1.0, %v190_v40 }
  0x7b   :  { %v170_v49 = vmul.f32 %v288_v43, %v168_v30  ;;  %289 = vpow2.f32 %v50_v44  ;;  %vm175_vm8 = vweird.f32 %v288_v43 }
  0x7c   :  { %v192_v51 = vmul.f32 %v286_v33, %v191_v45  ;;  %vm423_vm11 = vmor %vm174_vm7, %vm175_vm8 }
  0x7d   :  { %v171_v53 = vsub.f32 1.0, %v170_v49 }
  0x7e   :  { %v193_v56 = vadd.f32 %v286_v33, %v192_v51  ;;  %v47_v57 = vpop.xlane.xlu0 %46  ;;  %v73_v8 = vpop.permute.xlu1 %72 }
  0x7f   :  { %v172_v58 = vmul.f32 %v288_v43, %v171_v53  ;;  %v49_v60 = vsub.f32 %v377_v6, %v47_v57  ;;  %vm75_vm13 = vcmp.eq.s32.totalorder %v403_v31, %v73_v8  ;;  %vm122_vm15 = vcmp.eq.f32.partialorder %v377_v6, %v47_v57 }
  0x80   :  { %v197_v63 = vsel %vm196_vm9, %v286_v33, %v193_v56  ;;  %v77_v16 = vsel %vm75_vm13, %v377_v6, 0.0  ;;  %v125_v24 = vsel %vm122_vm15, %v123_v23, 6.0 }
  0x81   :  { %v173_v2 = vadd.f32 %v288_v43, %v172_v58  ;;  %v202_v3 = vsel %vm199_vm10, %v201_v52, %v197_v63  ;;  %v290_v4 = vpop.eup %289  ;;  %v52_v5 = vmul.f32 1.442695, %v49_v60  ;;  %v81_v19 = vsel %vm41_vm0, %v77_v16, 0.0 }
  0x82   :  { %112 = vadd.xlane.f32.xlu2 %v111_v55  ;;  %v54_v9 = vsel %vm41_vm0, %v290_v4, 0.0  ;;  %v203_v11 = vmul.f32 %v202_v3, %v187_v59  ;;  %v129_v25 = vsel %vm41_vm0, %v125_v24, inf }
  0x83   :  { %v177_v10 = vsel %vm423_vm11, %v288_v43, %v173_v2  ;;  %291 = vpow2.f32 %v52_v5  ;;  %55 = vadd.xlane.f32.xlu0 %v54_v9 }
  0x84   :  { %v182_v13 = vsel %vm179_vm12, %v181_v62, %v177_v10 }
  0x85   :  { %v183_v14 = vmul.f32 %v182_v13, %v163_v26  ;;  %v139_v26 = vsub.f32 %v365_v1, %v382_v7 }
  0x87   :  { %v204_v15 = vsub.f32 %v183_v14, %v203_v11  ;;  %v140_v27 = vand.u32 2147483647, %v139_v26 }
  0x89   :  { %v216_v17 = vsub.f32 1.0, %v204_v15  ;;  %v292_v18 = vpop.eup %291 }
  0x8a   :  { %v57_v20 = vsel %vm41_vm0, %v292_v18, 0.0 }
  0x8b   :  { %v217_v21 = vsel %vm138_vm14, %v216_v17, 0.0  ;;  %82 = vadd.xlane.f32.xlu0 %v81_v19  ;;  %58 = vadd.xlane.f32.xlu1 %v57_v20 }
  0x8c   :  { %v218_v22 = vsel %vm96_vm4, %v217_v21, 0.0 }
  0x8d   :  { %219 = vadd.xlane.f32.xlu2 %v218_v22 }
  0x95   :  { %130 = vmin.xlane.f32.xlu2 %v129_v25 }
  0x9f   :  { %142 = vrot.lane.b32.xlu0 %v140_v27, %s324_s24 }
  0xed   :  { %v80_v28 = vpop.xlane.xlu2 %79 }
  0xf5   :  { %v113_v29 = vpop.xlane.xlu2 %112 }
  0xf6   :  { %v56_v30 = vpop.xlane.xlu0 %55 }
  0xf7   :  { %293 = vlog2.f32 %v56_v30 }
  0xfd   :  { %v294_v32 = vpop.eup %293 }
  0xfe   :  { %v61_v33 = vmul.f32 0.6931472, %v294_v32  ;;  %v59_v34 = vpop.xlane.xlu1 %58  ;;  %v83_v44 = vpop.xlane.xlu0 %82 }
  0xff   :  { %295 = vlog2.f32 %v59_v34 }
 0x100   :  { %v220_v6 = vpop.xlane.xlu2 %219  ;;  %v64_v38 = vadd.f32 %v61_v33, %v407_v36 }
 0x101   :  { %v221_v59 = vrot.slane %v220_v6, 4 }
 0x102   :  { %v92_v40 = vsub.f32 %v64_v38, %v80_v28 }
 0x103   :  { %v222_v62 = vadd.f32 %v221_v59, %v220_v6 }
 0x104   :  { %v94_v47 = vmul.f32 %v92_v40, %v405_v35 }
 0x105   :  { %v296_v39 = vpop.eup %295  ;;  %v223_v4 = vrot.slane %v222_v62, 2 }
 0x106   :  { %v63_v41 = vmul.f32 0.6931472, %v296_v39  ;;  %v97_v50 = vsel %vm96_vm4, %v94_v47, 0.0 }
 0x107   :  { %v224_v12 = vadd.f32 %v223_v4, %v222_v62 }
 0x108   :  { %v131_v42 = vpop.xlane.xlu2 %130  ;;  %v65_v43 = vadd.f32 %v63_v41, %v47_v57  ;;  %v114_v57 = vrot.slane %v113_v29, 4 }
 0x109   :  { %vm270_vm1 = vcmp.lt.s32.totalorder %v131_v42, 0  ;;  %v271_v1 = vceil.f32 %v131_v42  ;;  %v272_v7 = vfloor.f32 %v131_v42  ;;  %v225_v18 = vrot.slane %v224_v12, 1 }
 0x10a   :  { %v93_v45 = vsub.f32 %v65_v43, %v83_v44  ;;  %v115_v58 = vadd.f32 %v114_v57, %v113_v29 }
 0x10b   :  { %v273_v46 = vsel %vm270_vm1, %v271_v1, %v272_v7  ;;  %v226_v25 = vadd.f32 %v225_v18, %v224_v12 }
 0x10c   :  { %v274_v48 = vcvt.f32.s32 %v273_v46  ;;  %v95_v49 = vmul.f32 %v93_v45, %v410_v37  ;;  %v124_v37 = vsel %vm121_vm2, %v123_v23, 6.0  ;;  %v116_v60 = vrot.slane %v115_v58, 2 }
 0x10d   :  { %v126_v56 = vsel %vm41_vm0, %v124_v37, inf }
 0x10e   :  { %135 = vst.msk [vmem:[%s473_s4 + $0x8] sm:$0xff] %vm96_vm4, %v274_v48  ;;  %v98_v51 = vsel %vm96_vm4, %v95_v49, 0.0  ;;  %v117_v3 = vadd.f32 %v116_v60, %v115_v58 }
 0x10f   :  { %v99_v52 = vadd.f32 %v98_v51, %v97_v50 }
 0x110   :  { %v118_v0 = vrot.slane %v117_v3, 1 }
 0x111   :  { %100 = vadd.xlane.f32.xlu0 %v99_v52  ;;  %v143_v53 = vpop.permute.xlu0 %142 }
 0x112   :  { %v145_v54 = vadd.f32 %v143_v53, %v140_v27  ;;  %v119_v15 = vadd.f32 %v118_v0, %v117_v3 }
 0x114   :  { %v205_v55 = vsel %vm138_vm14, %v145_v54, 0.0 }
 0x115   :  { %v206_v35 = vsel %vm96_vm4, %v205_v55, 0.0 }
 0x116   :  { %207 = vadd.xlane.f32.xlu1 %v206_v35 }
 0x11e   :  { %127 = vmin.xlane.f32.xlu1 %v126_v56 }
 0x184   :  { %v101_v61 = vpop.xlane.xlu0 %100 }
 0x185   :  { %v102_v63 = vrot.slane %v101_v61, 4 }
 0x187   :  { %v103_v2 = vadd.f32 %v102_v63, %v101_v61 }
 0x189   :  { %v104_v5 = vrot.slane %v103_v2, 2  ;;  %v208_v8 = vpop.xlane.xlu1 %207 }
 0x18a   :  { %v209_v9 = vrot.slane %v208_v8, 4 }
 0x18b   :  { %v105_v10 = vadd.f32 %v104_v5, %v103_v2 }
 0x18c   :  { %v210_v11 = vadd.f32 %v209_v9, %v208_v8 }
 0x18d   :  { %v106_v36 = vrot.slane %v105_v10, 1 }
 0x18e   :  { %v211_v13 = vrot.slane %v210_v11, 2 }
 0x18f   :  { %v107_v14 = vadd.f32 %v106_v36, %v105_v10 }
 0x190   :  { %v212_v16 = vadd.f32 %v211_v13, %v210_v11 }
 0x191   :  { %v128_v17 = vpop.xlane.xlu1 %127  ;;  %261 = vpush %v107_v14 }
 0x192   :  { %vm265_vm0 = vcmp.lt.s32.totalorder %v128_v17, 0  ;;  %v266_v19 = vceil.f32 %v128_v17  ;;  %v267_v20 = vfloor.f32 %v128_v17  ;;  %263 = vpush %v119_v15  ;;  %v213_v21 = vrot.slane %v212_v16, 1 }
 0x194   :  { %v268_v22 = vsel %vm265_vm0, %v266_v19, %v267_v20  ;;  %v214_v23 = vadd.f32 %v213_v21, %v212_v16 }
 0x195   :  { %v269_v24 = vcvt.f32.s32 %v268_v22 }
 0x196   :  { %275 = vpush %v214_v23 }
 0x197   :  { %134 = vst.msk [vmem:[%s473_s4] sm:$0xff] %vm96_vm4, %v269_v24  ;;  %vm228_vm4 = vcmp.eq.s32.totalorder %v403_v31, 0 }
 0x198   :  { %277 = vpush %v226_v25 }
 0x1c2   :  { %s262_s6 = spop %261 }
 0x1c3   :  { %s264_s7 = spop %263  ;;  %v238_v32 = vstv %s262_s6 }
 0x1c4   :  { %v236_v29 = vstv %s264_s7 }
 0x1c7   :  { %s276_s8 = spop %275 }
 0x1c8   :  { %v234_v26 = vstv %s276_s8 }
 0x1c9   :  { %s278_s9 = spop %277 }
 0x1ca   :  { %v232_v27 = vstv %s278_s9 }
 0x1cb   :  { %v233_v28 = vsel %vm231_vm3, %v232_v27, 0.0 }
 0x1cc   :  { %v235_v30 = vsel %vm230_vm5, %v234_v26, %v233_v28 }
 0x1cd   :  { %v237_v33 = vsel %vm229_vm6, %v236_v29, %v235_v30 }
 0x1ce   :  { %v239_v34 = vsel %vm228_vm4, %v238_v32, %v237_v33 }
 0x1cf   :  { %240 = vst [vmem:[#allocation2] sm:$0x1] %v239_v34 }
 0x1d0   :  { %253 = dma.vmem_to_hbm [thread:$0]  %s249_s11, 16, %s251_s14, [#allocation3]  }
 0x1d1   :  { %321 = dma.done.wait [#allocation3], 16  }
 0x1d2   :  { %322 = vsyncadd [#allocation3], 4294967280 }
 0x1d3   :  { %260 = vsyncpa [#allocation3], 1 }

</bundles_post_ra>
